<compile_context>
chip_gen: v5e
topology: v5e:2x2
jax: 0.10.0
libtpu: 0.0.40
codegen_flags: <defaults>
</compile_context>

<pallas_src>
import functools

import jax
import jax.numpy as jnp
from jax import lax
from jax.experimental import pallas as pl
from jax.experimental.pallas import tpu as pltpu


def _round_up(x, m):
    return ((x + m - 1) // m) * m


# ----------------------------------------------------------------------------
# Fused kernel: conv-matmul + bias + ReLU + BN stats (phase 0), BN + ReLU (phase 1)
# ----------------------------------------------------------------------------
def _make_fused_kernel(tm, nt, m_valid, mp, eps):
    inv_m = 1.0 / float(m_valid)
    needs_mask = mp > m_valid          # static: only mask when M was padded

    def kernel(w_ref, a_ref, b_ref, g_ref, bt_ref, o_ref,
               y_scr, psum_scr, psq_scr, ss_scr):
        phase = pl.program_id(0)
        i = pl.program_id(1)

        # ---- phase 0: conv as matmul + bias + ReLU, stash tile, accumulate stats ----
        @pl.when(phase == 0)
        def _conv_phase():
            @pl.when(i == 0)
            def _():
                psum_scr[...] = jnp.zeros_like(psum_scr)
                psq_scr[...] = jnp.zeros_like(psq_scr)

            acc = jnp.dot(w_ref[...], a_ref[...],
                          preferred_element_type=jnp.float32)      # (C_out, tm) on MXU
            y = jnp.maximum(acc + b_ref[...], 0.0)
            if needs_mask:
                lane = lax.broadcasted_iota(jnp.int32, (1, tm), 1)
                y = jnp.where(i * tm + lane < m_valid, y, 0.0)      # zero padded columns
            y_scr[i] = y                                            # keep tile in VMEM
            psum_scr[...] += jnp.sum(y, axis=-1, keepdims=True)     # XLU lane reduce
            psq_scr[...] += jnp.sum(y * y, axis=-1, keepdims=True)

        # ---- phase 1: finalize BN scale/shift once, normalize + ReLU each tile ----
        @pl.when(phase == 1)
        def _bn_phase():
            @pl.when(i == 0)
            def _():
                mean = psum_scr[...] * inv_m
                var = psq_scr[...] * inv_m - mean * mean            # biased var (training BN)
                inv_std = lax.rsqrt(var + eps)
                scale = g_ref[...] * inv_std
                ss_scr[0] = scale
                ss_scr[1] = bt_ref[...] - mean * scale

            o_ref[...] = jnp.maximum(y_scr[i] * ss_scr[0] + ss_scr[1], 0.0)

    return kernel


# ----------------------------------------------------------------------------
# Wrapper
# ----------------------------------------------------------------------------
def _im2col_3d_t(x, kernel_size, padding, stride):
    """x: (N, C, D, H, W) -> transposed patches (C*k^3, M), plus output spatial dims."""
    n, c, d, h, w = x.shape
    k, p, s = kernel_size, padding, stride
    d_out = (d + 2 * p - k) // s + 1
    h_out = (h + 2 * p - k) // s + 1
    w_out = (w + 2 * p - k) // s + 1
    xp = jnp.pad(x, ((0, 0), (0, 0), (p, p), (p, p), (p, p)))
    cols = []
    for dz in range(k):
        for dy in range(k):
            for dx in range(k):
                cols.append(xp[:, :,
                               dz:dz + (d_out - 1) * s + 1:s,
                               dy:dy + (h_out - 1) * s + 1:s,
                               dx:dx + (w_out - 1) * s + 1:s])
    # (k^3, N, C, Do, Ho, Wo) -> (C, k^3, N, Do, Ho, Wo) -> (K, M)
    patches = jnp.stack(cols, axis=0)
    patches = jnp.transpose(patches, (2, 0, 1, 3, 4, 5))
    patches = patches.reshape(c * k ** 3, n * d_out * h_out * w_out)
    return patches, (d_out, h_out, w_out)


@functools.partial(
    jax.jit,
    static_argnames=("kernel_size", "padding", "stride", "eps", "tm", "compute_dtype"))
def conv_block_forward(x, weight, bias, gamma, beta,
                       kernel_size=3, padding=1, stride=1, eps=1e-5,
                       tm=1024, compute_dtype=jnp.float32):
    """x: (N, C_in, D, H, W) NCDHW, weight: (C_out, C_in, k, k, k)."""
    n = x.shape[0]
    c_out = weight.shape[0]
    k = kernel_size

    patches_t, (d_out, h_out, w_out) = _im2col_3d_t(x, k, padding, stride)
    kk, m = patches_t.shape

    # Tile the M (lane) axis; pad M up to a tile multiple (masked out of the BN stats).
    tm = _round_up(min(tm, _round_up(m, 128)), 128)
    nt = -(-m // tm)
    mp = nt * tm
    patches_t = jnp.pad(patches_t, ((0, 0), (0, mp - m))).astype(compute_dtype)

    w_mat = weight.reshape(c_out, kk).astype(compute_dtype)      # (C_out, K), VMEM-resident
    b_col = bias.reshape(c_out, 1).astype(jnp.float32)
    g_col = gamma.reshape(c_out, 1).astype(jnp.float32)
    bt_col = beta.reshape(c_out, 1).astype(jnp.float32)

    out = pl.pallas_call(
        _make_fused_kernel(tm, nt, m, mp, eps),
        out_shape=jax.ShapeDtypeStruct((c_out, mp), jnp.float32),
        grid_spec=pltpu.PrefetchScalarGridSpec(
            num_scalar_prefetch=0,
            grid=(2, nt),                                         # (phase, tile), phase outermost
            in_specs=[
                pl.BlockSpec((c_out, kk), lambda p, i: (0, 0)),   # weight (resident)
                # im2col tile; pinned to the last block in phase 1 -> no re-fetch
                pl.BlockSpec((kk, tm),
                             lambda p, i: (0, i * (1 - p) + (nt - 1) * p)),
                pl.BlockSpec((c_out, 1), lambda p, i: (0, 0)),    # bias
                pl.BlockSpec((c_out, 1), lambda p, i: (0, 0)),    # gamma
                pl.BlockSpec((c_out, 1), lambda p, i: (0, 0)),    # beta
            ],
            # output pinned to block 0 during phase 0 (never written there), walks tiles in phase 1
            out_specs=pl.BlockSpec((c_out, tm), lambda p, i: (0, i * p)),
            scratch_shapes=[
                pltpu.VMEM((nt, c_out, tm), jnp.float32),         # post-ReLU conv activations
                pltpu.VMEM((c_out, 1), jnp.float32),              # running sum
                pltpu.VMEM((c_out, 1), jnp.float32),              # running sum of squares
                pltpu.VMEM((2, c_out, 1), jnp.float32),           # BN scale / shift
            ],
        ),
        compiler_params=pltpu.CompilerParams(
            dimension_semantics=("arbitrary", "arbitrary"),       # sequential: stats accumulate
            vmem_limit_bytes=64 * 1024 * 1024),
    )(w_mat, patches_t, b_col, g_col, bt_col)

    # (C_out, Mp) -> (C_out, N, Do, Ho, Wo) -> NCDHW
    out = out[:, :m].reshape(c_out, n, d_out, h_out, w_out)
    return jnp.transpose(out, (1, 0, 2, 3, 4))


# ----------------------------------------------------------------------------
# Pure-JAX reference (correctness sanity check)
# ----------------------------------------------------------------------------
def reference_forward(x, weight, bias, gamma, beta,
                      kernel_size=3, padding=1, stride=1, eps=1e-5):
    y = lax.conv_general_dilated(
        x, weight,
        window_strides=(stride,) * 3,
        padding=[(padding, padding)] * 3,
        dimension_numbers=("NCDHW", "OIDHW", "NCDHW"))
    y = y + bias.reshape(1, -1, 1, 1, 1)
    y = jnp.maximum(y, 0.0)
    mean = jnp.mean(y, axis=(0, 2, 3, 4), keepdims=True)
    var = jnp.mean((y - mean) ** 2, axis=(0, 2, 3, 4), keepdims=True)
    y = (y - mean) * lax.rsqrt(var + eps)
    y = y * gamma.reshape(1, -1, 1, 1, 1) + beta.reshape(1, -1, 1, 1, 1)
    return jnp.maximum(y, 0.0)


if __name__ == "__main__":
    # conv_block(in_channels=4, out_channels=8, kernel_size=3, padding=1)
    N, C_IN, C_OUT, K, PAD, STRIDE = 2, 4, 8, 3, 1, 1
    D = H = W = 8

    key = jax.random.PRNGKey(0)
    kx, kw, kb = jax.random.split(key, 3)

    x = jax.random.normal(kx, (N, C_IN, D, H, W), dtype=jnp.float32)
    fan_in = C_IN * K * K * K
    bound = 1.0 / (fan_in ** 0.5)
    weight = jax.random.uniform(kw, (C_OUT, C_IN, K, K, K),
                                minval=-bound, maxval=bound, dtype=jnp.float32)
    bias = jax.random.uniform(kb, (C_OUT,), minval=-bound, maxval=bound,
                              dtype=jnp.float32)
    gamma = jnp.ones((C_OUT,), jnp.float32)   # BatchNorm3d default weight
    beta = jnp.zeros((C_OUT,), jnp.float32)   # BatchNorm3d default bias

    out = conv_block_forward(x, weight, bias, gamma, beta,
                             kernel_size=K, padding=PAD, stride=STRIDE)
    out = jax.block_until_ready(out)

    ref = reference_forward(x, weight, bias, gamma, beta,
                            kernel_size=K, padding=PAD, stride=STRIDE)
    assert out.shape == ref.shape == (N, C_OUT, D, H, W)
    assert jnp.allclose(out, ref, atol=2e-3, rtol=2e-3), "mismatch vs reference"

    print("KERNEL_OK")
</pallas_src>

<mosaic_0001>
module attributes {stable_mosaic.version = 11 : i64} {
  func.func @kernel(%arg0: i32, %arg1: i32, %arg2: memref<8x108xf32, #tpu.memory_space<vmem>>, %arg3: memref<108x1024xf32, #tpu.memory_space<vmem>>, %arg4: memref<8x1xf32, #tpu.memory_space<vmem>>, %arg5: memref<8x1xf32, #tpu.memory_space<vmem>>, %arg6: memref<8x1xf32, #tpu.memory_space<vmem>>, %arg7: memref<8x1024xf32, #tpu.memory_space<vmem>>, %arg8: memref<1x8x1024xf32, #tpu.memory_space<vmem>>, %arg9: memref<8x1xf32, #tpu.memory_space<vmem>>, %arg10: memref<8x1xf32, #tpu.memory_space<vmem>>, %arg11: memref<2x8x1xf32, #tpu.memory_space<vmem>>) attributes {dimension_semantics = [#tpu.dimension_semantics<arbitrary>, #tpu.dimension_semantics<arbitrary>], iteration_bounds = array<i64: 2, 1>, scalar_prefetch = 0 : i64, scratch_operands = 4 : i64, tpu.core_type = #tpu.core_type<tc>, window_params = [{pipeline_mode = #tpu.pipeline_mode<synchronous>, transform_indices = @transform_0, window_bounds = array<i64: 8, 108>}, {transform_indices = @transform_1, window_bounds = array<i64: 108, 1024>}, {pipeline_mode = #tpu.pipeline_mode<synchronous>, transform_indices = @transform_2, window_bounds = array<i64: 8, 1>}, {pipeline_mode = #tpu.pipeline_mode<synchronous>, transform_indices = @transform_3, window_bounds = array<i64: 8, 1>}, {pipeline_mode = #tpu.pipeline_mode<synchronous>, transform_indices = @transform_4, window_bounds = array<i64: 8, 1>}, {transform_indices = @transform_5, window_bounds = array<i64: 8, 1024>}]} {
    %c0_i32 = arith.constant 0 : i32
    %0 = arith.cmpi eq, %arg0, %c0_i32 : i32
    %1 = arith.extui %0 : i1 to i32
    %c0_i32_0 = arith.constant 0 : i32
    %2 = arith.cmpi ne, %1, %c0_i32_0 : i32
    scf.if %2 {
      %c0_i32_2 = arith.constant 0 : i32
      %6 = arith.cmpi eq, %arg1, %c0_i32_2 : i32
      %7 = arith.extui %6 : i1 to i32
      %c0_i32_3 = arith.constant 0 : i32
      %8 = arith.cmpi ne, %7, %c0_i32_3 : i32
      scf.if %8 {
        %cst_22 = arith.constant 0.000000e+00 : f32
        %32 = vector.broadcast %cst_22 : f32 to vector<8x1xf32>
        %c0_23 = arith.constant 0 : index
        %c0_24 = arith.constant 0 : index
        %33 = vector.load %arg9[%c0_23, %c0_24] : memref<8x1xf32, #tpu.memory_space<vmem>>, vector<8x1xf32>
        tpu.vector_store %arg9[%c0_23, %c0_24], %32 {strides = array<i32>} : memref<8x1xf32, #tpu.memory_space<vmem>>, vector<8x1xf32>,
        %cst_25 = arith.constant 0.000000e+00 : f32
        %34 = vector.broadcast %cst_25 : f32 to vector<8x1xf32>
        %c0_26 = arith.constant 0 : index
        %c0_27 = arith.constant 0 : index
        %35 = vector.load %arg10[%c0_26, %c0_27] : memref<8x1xf32, #tpu.memory_space<vmem>>, vector<8x1xf32>
        tpu.vector_store %arg10[%c0_26, %c0_27], %34 {strides = array<i32>} : memref<8x1xf32, #tpu.memory_space<vmem>>, vector<8x1xf32>,
      } else {
      }
      %c0 = arith.constant 0 : index
      %c0_4 = arith.constant 0 : index
      %9 = vector.load %arg2[%c0, %c0_4] : memref<8x108xf32, #tpu.memory_space<vmem>>, vector<8x108xf32>
      %c0_5 = arith.constant 0 : index
      %c0_6 = arith.constant 0 : index
      %10 = vector.load %arg3[%c0_5, %c0_6] : memref<108x1024xf32, #tpu.memory_space<vmem>>, vector<108x1024xf32>
      %cst = arith.constant dense<0.000000e+00> : vector<8x1024xf32>
      %11 = tpu.matmul %9, %10, %cst {dimension_numbers = #tpu.dot_dimension_numbers<[1], [0], [0], [1], [0, 0, 1, 1], [], []>} : vector<8x108xf32>, vector<108x1024xf32>, vector<8x1024xf32> -> vector<8x1024xf32>
      %c0_7 = arith.constant 0 : index
      %c0_8 = arith.constant 0 : index
      %12 = vector.load %arg4[%c0_7, %c0_8] : memref<8x1xf32, #tpu.memory_space<vmem>>, vector<8x1xf32>
      %13 = vector.broadcast %12 : vector<8x1xf32> to vector<8x1024xf32>
      %14 = arith.addf %11, %13 : vector<8x1024xf32>
      %cst_9 = arith.constant 0.000000e+00 : f32
      %15 = vector.broadcast %cst_9 : f32 to vector<8x1024xf32>
      %16 = arith.maximumf %14, %15 : vector<8x1024xf32>
      %17 = arith.index_cast %arg1 : i32 to index
      %c0_10 = arith.constant 0 : index
      %c0_11 = arith.constant 0 : index
      %18 = vector.load %arg8[%17, %c0_10, %c0_11] : memref<1x8x1024xf32, #tpu.memory_space<vmem>>, vector<1x8x1024xf32>
      %19 = vector.shape_cast %18 : vector<1x8x1024xf32> to vector<8x1024xf32>
      %20 = vector.shape_cast %16 : vector<8x1024xf32> to vector<1x8x1024xf32>
      tpu.vector_store %arg8[%17, %c0_10, %c0_11], %20 {strides = array<i32>} : memref<1x8x1024xf32, #tpu.memory_space<vmem>>, vector<1x8x1024xf32>,
      %c0_12 = arith.constant 0 : index
      %c0_13 = arith.constant 0 : index
      %21 = vector.load %arg9[%c0_12, %c0_13] : memref<8x1xf32, #tpu.memory_space<vmem>>, vector<8x1xf32>
      %cst_14 = arith.constant dense<0.000000e+00> : vector<8xf32>
      %22 = vector.multi_reduction <add>, %16, %cst_14 [1] : vector<8x1024xf32> to vector<8xf32>
      %23 = vector.shape_cast %22 : vector<8xf32> to vector<8x1xf32>
      %24 = arith.addf %21, %23 : vector<8x1xf32>
      %c0_15 = arith.constant 0 : index
      %c0_16 = arith.constant 0 : index
      %25 = vector.load %arg9[%c0_15, %c0_16] : memref<8x1xf32, #tpu.memory_space<vmem>>, vector<8x1xf32>
      tpu.vector_store %arg9[%c0_15, %c0_16], %24 {strides = array<i32>} : memref<8x1xf32, #tpu.memory_space<vmem>>, vector<8x1xf32>,
      %c0_17 = arith.constant 0 : index
      %c0_18 = arith.constant 0 : index
      %26 = vector.load %arg10[%c0_17, %c0_18] : memref<8x1xf32, #tpu.memory_space<vmem>>, vector<8x1xf32>
      %27 = arith.mulf %16, %16 : vector<8x1024xf32>
      %cst_19 = arith.constant dense<0.000000e+00> : vector<8xf32>
      %28 = vector.multi_reduction <add>, %27, %cst_19 [1] : vector<8x1024xf32> to vector<8xf32>
      %29 = vector.shape_cast %28 : vector<8xf32> to vector<8x1xf32>
      %30 = arith.addf %26, %29 : vector<8x1xf32>
      %c0_20 = arith.constant 0 : index
      %c0_21 = arith.constant 0 : index
      %31 = vector.load %arg10[%c0_20, %c0_21] : memref<8x1xf32, #tpu.memory_space<vmem>>, vector<8x1xf32>
      tpu.vector_store %arg10[%c0_20, %c0_21], %30 {strides = array<i32>} : memref<8x1xf32, #tpu.memory_space<vmem>>, vector<8x1xf32>,
    } else {
    }
    %c1_i32 = arith.constant 1 : i32
    %3 = arith.cmpi eq, %arg0, %c1_i32 : i32
    %4 = arith.extui %3 : i1 to i32
    %c0_i32_1 = arith.constant 0 : i32
    %5 = arith.cmpi ne, %4, %c0_i32_1 : i32
    scf.if %5 {
      %c0_i32_2 = arith.constant 0 : i32
      %6 = arith.cmpi eq, %arg1, %c0_i32_2 : i32
      %7 = arith.extui %6 : i1 to i32
      %c0_i32_3 = arith.constant 0 : i32
      %8 = arith.cmpi ne, %7, %c0_i32_3 : i32
      scf.if %8 {
        %c0_12 = arith.constant 0 : index
        %c0_13 = arith.constant 0 : index
        %23 = vector.load %arg9[%c0_12, %c0_13] : memref<8x1xf32, #tpu.memory_space<vmem>>, vector<8x1xf32>
        %cst_14 = arith.constant 9.765625E-4 : f32
        %24 = vector.broadcast %cst_14 : f32 to vector<8x1xf32>
        %25 = arith.mulf %23, %24 : vector<8x1xf32>
        %c0_15 = arith.constant 0 : index
        %c0_16 = arith.constant 0 : index
        %26 = vector.load %arg10[%c0_15, %c0_16] : memref<8x1xf32, #tpu.memory_space<vmem>>, vector<8x1xf32>
        %cst_17 = arith.constant 9.765625E-4 : f32
        %27 = vector.broadcast %cst_17 : f32 to vector<8x1xf32>
        %28 = arith.mulf %26, %27 : vector<8x1xf32>
        %29 = arith.mulf %25, %25 : vector<8x1xf32>
        %30 = arith.subf %28, %29 : vector<8x1xf32>
        %cst_18 = arith.constant 9.99999974E-6 : f32
        %31 = vector.broadcast %cst_18 : f32 to vector<8x1xf32>
        %32 = arith.addf %30, %31 : vector<8x1xf32>
        %33 = math.rsqrt %32 : vector<8x1xf32>
        %c0_19 = arith.constant 0 : index
        %c0_20 = arith.constant 0 : index
        %34 = vector.load %arg5[%c0_19, %c0_20] : memref<8x1xf32, #tpu.memory_space<vmem>>, vector<8x1xf32>
        %35 = arith.mulf %34, %33 : vector<8x1xf32>
        %c0_21 = arith.constant 0 : index
        %c0_22 = arith.constant 0 : index
        %c0_23 = arith.constant 0 : index
        %36 = vector.load %arg11[%c0_21, %c0_22, %c0_23] : memref<2x8x1xf32, #tpu.memory_space<vmem>>, vector<1x8x1xf32>
        %37 = vector.shape_cast %36 : vector<1x8x1xf32> to vector<8x1xf32>
        %38 = vector.shape_cast %35 : vector<8x1xf32> to vector<1x8x1xf32>
        tpu.vector_store %arg11[%c0_21, %c0_22, %c0_23], %38 {strides = array<i32>} : memref<2x8x1xf32, #tpu.memory_space<vmem>>, vector<1x8x1xf32>,
        %c0_24 = arith.constant 0 : index
        %c0_25 = arith.constant 0 : index
        %39 = vector.load %arg6[%c0_24, %c0_25] : memref<8x1xf32, #tpu.memory_space<vmem>>, vector<8x1xf32>
        %40 = arith.mulf %25, %35 : vector<8x1xf32>
        %41 = arith.subf %39, %40 : vector<8x1xf32>
        %c1_26 = arith.constant 1 : index
        %c0_27 = arith.constant 0 : index
        %c0_28 = arith.constant 0 : index
        %42 = vector.load %arg11[%c1_26, %c0_27, %c0_28] : memref<2x8x1xf32, #tpu.memory_space<vmem>>, vector<1x8x1xf32>
        %43 = vector.shape_cast %42 : vector<1x8x1xf32> to vector<8x1xf32>
        %44 = vector.shape_cast %41 : vector<8x1xf32> to vector<1x8x1xf32>
        tpu.vector_store %arg11[%c1_26, %c0_27, %c0_28], %44 {strides = array<i32>} : memref<2x8x1xf32, #tpu.memory_space<vmem>>, vector<1x8x1xf32>,
      } else {
      }
      %9 = arith.index_cast %arg1 : i32 to index
      %c0 = arith.constant 0 : index
      %c0_4 = arith.constant 0 : index
      %10 = vector.load %arg8[%9, %c0, %c0_4] : memref<1x8x1024xf32, #tpu.memory_space<vmem>>, vector<1x8x1024xf32>
      %11 = vector.shape_cast %10 : vector<1x8x1024xf32> to vector<8x1024xf32>
      %c0_5 = arith.constant 0 : index
      %c0_6 = arith.constant 0 : index
      %c0_7 = arith.constant 0 : index
      %12 = vector.load %arg11[%c0_5, %c0_6, %c0_7] : memref<2x8x1xf32, #tpu.memory_space<vmem>>, vector<1x8x1xf32>
      %13 = vector.shape_cast %12 : vector<1x8x1xf32> to vector<8x1xf32>
      %14 = vector.broadcast %13 : vector<8x1xf32> to vector<8x1024xf32>
      %15 = arith.mulf %11, %14 : vector<8x1024xf32>
      %c1 = arith.constant 1 : index
      %c0_8 = arith.constant 0 : index
      %c0_9 = arith.constant 0 : index
      %16 = vector.load %arg11[%c1, %c0_8, %c0_9] : memref<2x8x1xf32, #tpu.memory_space<vmem>>, vector<1x8x1xf32>
      %17 = vector.shape_cast %16 : vector<1x8x1xf32> to vector<8x1xf32>
      %18 = vector.broadcast %17 : vector<8x1xf32> to vector<8x1024xf32>
      %19 = arith.addf %15, %18 : vector<8x1024xf32>
      %cst = arith.constant 0.000000e+00 : f32
      %20 = vector.broadcast %cst : f32 to vector<8x1024xf32>
      %21 = arith.maximumf %19, %20 : vector<8x1024xf32>
      %c0_10 = arith.constant 0 : index
      %c0_11 = arith.constant 0 : index
      %22 = vector.load %arg7[%c0_10, %c0_11] : memref<8x1024xf32, #tpu.memory_space<vmem>>, vector<8x1024xf32>
      tpu.vector_store %arg7[%c0_10, %c0_11], %21 {strides = array<i32>} : memref<8x1024xf32, #tpu.memory_space<vmem>>, vector<8x1024xf32>,
    } else {
    }
    return
  }
  func.func @transform_0(%arg0: i32, %arg1: i32) -> (i32, i32) {
    %c0_i32 = arith.constant 0 : i32
    %c0_i32_0 = arith.constant 0 : i32
    %c0_i32_1 = arith.constant 0 : i32
    return %c0_i32, %c0_i32_0 : i32, i32
  }
  func.func @transform_1(%arg0: i32, %arg1: i32) -> (i32, i32) {
    %c1_i32 = arith.constant 1 : i32
    %0 = arith.subi %c1_i32, %arg0 : i32
    %1 = arith.muli %arg1, %0 : i32
    %c0_i32 = arith.constant 0 : i32
    %2 = arith.muli %c0_i32, %arg0 : i32
    %3 = arith.addi %1, %2 : i32
    %c0_i32_0 = arith.constant 0 : i32
    %c0_i32_1 = arith.constant 0 : i32
    return %c0_i32_0, %3 : i32, i32
  }
  func.func @transform_2(%arg0: i32, %arg1: i32) -> (i32, i32) {
    %c0_i32 = arith.constant 0 : i32
    %c0_i32_0 = arith.constant 0 : i32
    %c0_i32_1 = arith.constant 0 : i32
    return %c0_i32, %c0_i32_0 : i32, i32
  }
  func.func @transform_3(%arg0: i32, %arg1: i32) -> (i32, i32) {
    %c0_i32 = arith.constant 0 : i32
    %c0_i32_0 = arith.constant 0 : i32
    %c0_i32_1 = arith.constant 0 : i32
    return %c0_i32, %c0_i32_0 : i32, i32
  }
  func.func @transform_4(%arg0: i32, %arg1: i32) -> (i32, i32) {
    %c0_i32 = arith.constant 0 : i32
    %c0_i32_0 = arith.constant 0 : i32
    %c0_i32_1 = arith.constant 0 : i32
    return %c0_i32, %c0_i32_0 : i32, i32
  }
  func.func @transform_5(%arg0: i32, %arg1: i32) -> (i32, i32) {
    %0 = arith.muli %arg1, %arg0 : i32
    %c0_i32 = arith.constant 0 : i32
    %c0_i32_0 = arith.constant 0 : i32
    return %c0_i32, %0 : i32, i32
  }
}

</mosaic_0001>

<bundles_post_ra>
// kernel: conv_block_forward.1
= control target key start
LH: loop header
LB: loop body
LE: loop exit
PB: predicated region body
PF: predicated region fallthrough
CT: control target
= control target key end

     0   :  { %s908_s18 = smov 0   ;;  %s910_s19 = smov 0   ;;  %s1327_s0 = inlined_call_operand.vmem [shape: f32[8,108], index: 0, kind: input, shape index: {}]   ;;  %s1328_s1 = inlined_call_operand.vmem [shape: f32[108,1024], index: 1, kind: input, shape index: {}]   ;;  %s1329_s2 = inlined_call_operand.vmem [shape: f32[8,1], index: 2, kind: input, shape index: {}]   ;;  %s1330_s3 = inlined_call_operand.vmem [shape: f32[8,1], index: 3, kind: input, shape index: {}]   ;;  %s1331_s4 = inlined_call_operand.vmem [shape: f32[8,1], index: 4, kind: input, shape index: {}]   ;;  %s1332_s5 = inlined_call_operand.vmem [shape: f32[8,1024], index: 5, kind: output, shape index: {}]  }
   0x1   :  { %s912_s20 = smov 0  }
   0x2 LB: > { %s27_s21 = sadd.s32 1, %s869_s19  ;;  %p797_p0 = scmp.ge.s32.totalorder %s873_s20, 1  ;;  %s873_s20 = sphi %s912_s20, %s15_s20   ;;  %s869_s19 = sphi %s910_s19, %s1334_s19   ;;  %s865_s18 = sphi %s908_s18, %s1333_s18  }
   0x3   : > { %p29_p1 = scmp.ge.s32.totalorder %s27_s21, 2  ;;  %p210_p2 = scmp.lt.s32.totalorder %s873_s20, 3 }
   0x5   : > { %s1336_s21 = smov (%p29_p1, %s27_s21), 0  ;;  %p211_p3 = pnand %p797_p0, %p210_p2 }
   0x6   : > { %p798_p4 = scmp.ne.s32.totalorder (!%p211_p3), %s865_s18, 0 }
   0x7   : > { %214 = sbr.rel (%p211_p3) target bundleno = 517 (0x205), region = 40 }
   0xc   : > { %262 = sbr.rel (%p798_p4) target bundleno = 338 (0x152), region = 44 }
  0x11   : > { %v375_v0 = vld [vmem:[%s1328_s1 + $0x340] sm:$0xf]  ;;  %vm393_vm0 = vcmask 1043456   ;;  %v376_v1 = vld [vmem:[%s1328_s1 + $0x348] sm:$0xf]  ;;  %v369_v6 = vld [vmem:[%s1328_s1 + $0x310] sm:$0xff] }
  0x12   : > { %v367_v2 = vld [vmem:[%s1328_s1 + $0x300] sm:$0xff]  ;;  %799 = vmatpush.msk.msra.mxu0 %vm393_vm0, %v375_v0  ;;  %801 = vmatpush.msk.msra.mxu1 %vm393_vm0, %v376_v1  ;;  %v377_v3 = vld [vmem:[%s1328_s1 + $0x350] sm:$0xf]  ;;  %v378_v4 = vld [vmem:[%s1328_s1 + $0x358] sm:$0xf]  ;;  %vm389_vm1 = vcmask 883712  }
  0x13   : > { %v368_v5 = vld [vmem:[%s1328_s1 + $0x308] sm:$0xff]  ;;  %803 = vmatpush.msk.msra.mxu2 %vm393_vm0, %v377_v3  ;;  %805 = vmatpush.msk.msra.mxu3 %vm393_vm0, %v378_v4  ;;  %v370_v7 = vld [vmem:[%s1328_s1 + $0x318] sm:$0xff]  ;;  %v359_v8 = vld [vmem:[%s1328_s1 + $0x2c0] sm:$0xff]  ;;  %vm267_vm2 = vcmask 7168  }
  0x14   : > { %421 = vmatpush.msra.mxu0 %v367_v2  ;;  %441 = vmatpush.msra.mxu1 %v368_v5  ;;  %v360_v9 = vld [vmem:[%s1328_s1 + $0x2c8] sm:$0xff]  ;;  %v361_v10 = vld [vmem:[%s1328_s1 + $0x2d0] sm:$0xff]  ;;  %v362_v11 = vld [vmem:[%s1328_s1 + $0x2d8] sm:$0xff] }
  0x15   : > { %461 = vmatpush.msra.mxu2 %v369_v6  ;;  %481 = vmatpush.msra.mxu3 %v370_v7  ;;  %v351_v12 = vld [vmem:[%s1328_s1 + $0x280] sm:$0xff]  ;;  %v352_v13 = vld [vmem:[%s1328_s1 + $0x288] sm:$0xff]  ;;  %v353_v14 = vld [vmem:[%s1328_s1 + $0x290] sm:$0xff] }
  0x16   : > { %422 = vmatpush.msra.mxu0 %v359_v8  ;;  %442 = vmatpush.msra.mxu1 %v360_v9  ;;  %v354_v15 = vld [vmem:[%s1328_s1 + $0x298] sm:$0xff]  ;;  %v343_v16 = vld [vmem:[%s1328_s1 + $0x240] sm:$0xff]  ;;  %v344_v17 = vld [vmem:[%s1328_s1 + $0x248] sm:$0xff] }
  0x17   : > { %462 = vmatpush.msra.mxu2 %v361_v10  ;;  %482 = vmatpush.msra.mxu3 %v362_v11  ;;  %v345_v18 = vld [vmem:[%s1328_s1 + $0x250] sm:$0xff]  ;;  %v346_v19 = vld [vmem:[%s1328_s1 + $0x258] sm:$0xff]  ;;  %v335_v20 = vld [vmem:[%s1328_s1 + $0x200] sm:$0xff] }
  0x18   : > { %423 = vmatpush.msra.mxu0 %v351_v12  ;;  %443 = vmatpush.msra.mxu1 %v352_v13  ;;  %v336_v21 = vld [vmem:[%s1328_s1 + $0x208] sm:$0xff]  ;;  %v337_v22 = vld [vmem:[%s1328_s1 + $0x210] sm:$0xff]  ;;  %v338_v23 = vld [vmem:[%s1328_s1 + $0x218] sm:$0xff] }
  0x19   : > { %463 = vmatpush.msra.mxu2 %v353_v14  ;;  %483 = vmatpush.msra.mxu3 %v354_v15  ;;  %v327_v24 = vld [vmem:[%s1328_s1 + $0x1c0] sm:$0xff]  ;;  %v328_v25 = vld [vmem:[%s1328_s1 + $0x1c8] sm:$0xff]  ;;  %v329_v26 = vld [vmem:[%s1328_s1 + $0x1d0] sm:$0xff] }
  0x1a   : > { %424 = vmatpush.msra.mxu0 %v343_v16  ;;  %444 = vmatpush.msra.mxu1 %v344_v17  ;;  %v330_v27 = vld [vmem:[%s1328_s1 + $0x1d8] sm:$0xff]  ;;  %v319_v28 = vld [vmem:[%s1328_s1 + $0x180] sm:$0xff]  ;;  %v320_v29 = vld [vmem:[%s1328_s1 + $0x188] sm:$0xff] }
  0x1b   : > { %464 = vmatpush.msra.mxu2 %v345_v18  ;;  %484 = vmatpush.msra.mxu3 %v346_v19  ;;  %v321_v30 = vld [vmem:[%s1328_s1 + $0x190] sm:$0xff]  ;;  %v322_v31 = vld [vmem:[%s1328_s1 + $0x198] sm:$0xff]  ;;  %v311_v32 = vld [vmem:[%s1328_s1 + $0x140] sm:$0xff] }
  0x1c   : > { %425 = vmatpush.msra.mxu0 %v335_v20  ;;  %445 = vmatpush.msra.mxu1 %v336_v21  ;;  %v312_v33 = vld [vmem:[%s1328_s1 + $0x148] sm:$0xff]  ;;  %v313_v34 = vld [vmem:[%s1328_s1 + $0x150] sm:$0xff]  ;;  %v314_v35 = vld [vmem:[%s1328_s1 + $0x158] sm:$0xff] }
  0x1d   : > { %465 = vmatpush.msra.mxu2 %v337_v22  ;;  %485 = vmatpush.msra.mxu3 %v338_v23  ;;  %v303_v36 = vld [vmem:[%s1328_s1 + $0x100] sm:$0xff]  ;;  %v304_v37 = vld [vmem:[%s1328_s1 + $0x108] sm:$0xff]  ;;  %v305_v38 = vld [vmem:[%s1328_s1 + $0x110] sm:$0xff] }
  0x1e   : > { %426 = vmatpush.msra.mxu0 %v327_v24  ;;  %446 = vmatpush.msra.mxu1 %v328_v25  ;;  %v306_v39 = vld [vmem:[%s1328_s1 + $0x118] sm:$0xff]  ;;  %v295_v40 = vld [vmem:[%s1328_s1 + $0xc0] sm:$0xff]  ;;  %v296_v41 = vld [vmem:[%s1328_s1 + $0xc8] sm:$0xff] }
  0x1f   : > { %466 = vmatpush.msra.mxu2 %v329_v26  ;;  %486 = vmatpush.msra.mxu3 %v330_v27  ;;  %v297_v42 = vld [vmem:[%s1328_s1 + $0xd0] sm:$0xff]  ;;  %v298_v43 = vld [vmem:[%s1328_s1 + $0xd8] sm:$0xff]  ;;  %v287_v44 = vld [vmem:[%s1328_s1 + $0x80] sm:$0xff] }
  0x20   : > { %427 = vmatpush.msra.mxu0 %v319_v28  ;;  %447 = vmatpush.msra.mxu1 %v320_v29  ;;  %v288_v45 = vld [vmem:[%s1328_s1 + $0x88] sm:$0xff]  ;;  %v289_v46 = vld [vmem:[%s1328_s1 + $0x90] sm:$0xff]  ;;  %v290_v47 = vld [vmem:[%s1328_s1 + $0x98] sm:$0xff] }
  0x21   : > { %467 = vmatpush.msra.mxu2 %v321_v30  ;;  %487 = vmatpush.msra.mxu3 %v322_v31  ;;  %v279_v48 = vld [vmem:[%s1328_s1 + $0x40] sm:$0xff]  ;;  %v280_v49 = vld [vmem:[%s1328_s1 + $0x48] sm:$0xff]  ;;  %v281_v50 = vld [vmem:[%s1328_s1 + $0x50] sm:$0xff] }
  0x22   : > { %428 = vmatpush.msra.mxu0 %v311_v32  ;;  %448 = vmatpush.msra.mxu1 %v312_v33  ;;  %v282_v51 = vld [vmem:[%s1328_s1 + $0x58] sm:$0xff]  ;;  %v271_v52 = vld [vmem:[%s1328_s1] sm:$0xff]  ;;  %v272_v53 = vld [vmem:[%s1328_s1 + $0x8] sm:$0xff] }
  0x23   : > { %468 = vmatpush.msra.mxu2 %v313_v34  ;;  %488 = vmatpush.msra.mxu3 %v314_v35  ;;  %v273_v54 = vld [vmem:[%s1328_s1 + $0x10] sm:$0xff]  ;;  %v274_v55 = vld [vmem:[%s1328_s1 + $0x18] sm:$0xff]  ;;  %v379_v56 = vld [vmem:[%s1328_s1 + $0x360] sm:$0xf] }
  0x24   : > { %429 = vmatpush.msra.mxu0 %v303_v36  ;;  %449 = vmatpush.msra.mxu1 %v304_v37  ;;  %v380_v57 = vld [vmem:[%s1328_s1 + $0x368] sm:$0xf]  ;;  %v381_v58 = vld [vmem:[%s1328_s1 + $0x370] sm:$0xf]  ;;  %v382_v59 = vld [vmem:[%s1328_s1 + $0x378] sm:$0xf] }
  0x25   : > { %469 = vmatpush.msra.mxu2 %v305_v38  ;;  %489 = vmatpush.msra.mxu3 %v306_v39  ;;  %v371_v60 = vld [vmem:[%s1328_s1 + $0x320] sm:$0xff]  ;;  %v372_v61 = vld [vmem:[%s1328_s1 + $0x328] sm:$0xff]  ;;  %v373_v62 = vld [vmem:[%s1328_s1 + $0x330] sm:$0xff] }
  0x26   : > { %430 = vmatpush.msra.mxu0 %v295_v40  ;;  %450 = vmatpush.msra.mxu1 %v296_v41  ;;  %v374_v63 = vld [vmem:[%s1328_s1 + $0x338] sm:$0xff]  ;;  %v363_v0 = vld [vmem:[%s1328_s1 + $0x2e0] sm:$0xff]  ;;  %v364_v1 = vld [vmem:[%s1328_s1 + $0x2e8] sm:$0xff] }
  0x27   : > { %470 = vmatpush.msra.mxu2 %v297_v42  ;;  %490 = vmatpush.msra.mxu3 %v298_v43  ;;  %v365_v2 = vld [vmem:[%s1328_s1 + $0x2f0] sm:$0xff]  ;;  %v366_v3 = vld [vmem:[%s1328_s1 + $0x2f8] sm:$0xff]  ;;  %v355_v4 = vld [vmem:[%s1328_s1 + $0x2a0] sm:$0xff] }
  0x28   : > { %431 = vmatpush.msra.mxu0 %v287_v44  ;;  %451 = vmatpush.msra.mxu1 %v288_v45  ;;  %v356_v5 = vld [vmem:[%s1328_s1 + $0x2a8] sm:$0xff]  ;;  %v357_v6 = vld [vmem:[%s1328_s1 + $0x2b0] sm:$0xff]  ;;  %v358_v7 = vld [vmem:[%s1328_s1 + $0x2b8] sm:$0xff] }
  0x29   : > { %471 = vmatpush.msra.mxu2 %v289_v46  ;;  %491 = vmatpush.msra.mxu3 %v290_v47  ;;  %v347_v8 = vld [vmem:[%s1328_s1 + $0x260] sm:$0xff]  ;;  %v348_v9 = vld [vmem:[%s1328_s1 + $0x268] sm:$0xff]  ;;  %v349_v10 = vld [vmem:[%s1328_s1 + $0x270] sm:$0xff] }
  0x2a   : > { %432 = vmatpush.msra.mxu0 %v279_v48  ;;  %452 = vmatpush.msra.mxu1 %v280_v49  ;;  %v350_v11 = vld [vmem:[%s1328_s1 + $0x278] sm:$0xff]  ;;  %v339_v12 = vld [vmem:[%s1328_s1 + $0x220] sm:$0xff]  ;;  %v340_v13 = vld [vmem:[%s1328_s1 + $0x228] sm:$0xff] }
  0x2b   : > { %472 = vmatpush.msra.mxu2 %v281_v50  ;;  %492 = vmatpush.msra.mxu3 %v282_v51  ;;  %v341_v14 = vld [vmem:[%s1328_s1 + $0x230] sm:$0xff]  ;;  %v342_v15 = vld [vmem:[%s1328_s1 + $0x238] sm:$0xff]  ;;  %v331_v16 = vld [vmem:[%s1328_s1 + $0x1e0] sm:$0xff]  ;;  %v875_v50 = vmov 0  }
  0x2c   : > { %433 = vmatpush.msra.mxu0 %v271_v52  ;;  %453 = vmatpush.msra.mxu1 %v272_v53  ;;  %v332_v17 = vld [vmem:[%s1328_s1 + $0x1e8] sm:$0xff]  ;;  %v333_v18 = vld [vmem:[%s1328_s1 + $0x1f0] sm:$0xff]  ;;  %v334_v19 = vld [vmem:[%s1328_s1 + $0x1f8] sm:$0xff] }
  0x2d   : > { %473 = vmatpush.msra.mxu2 %v273_v54  ;;  %493 = vmatpush.msra.mxu3 %v274_v55  ;;  %v323_v20 = vld [vmem:[%s1328_s1 + $0x1a0] sm:$0xff]  ;;  %v324_v21 = vld [vmem:[%s1328_s1 + $0x1a8] sm:$0xff]  ;;  %v325_v22 = vld [vmem:[%s1328_s1 + $0x1b0] sm:$0xff] }
  0x2e   : > { %807 = vmatpush.msk.msrb.mxu0 %vm393_vm0, %v379_v56  ;;  %809 = vmatpush.msk.msrb.mxu1 %vm393_vm0, %v380_v57  ;;  %v326_v23 = vld [vmem:[%s1328_s1 + $0x1b8] sm:$0xff]  ;;  %v270_v24 = vld [vmem:[%s1327_s0] sm:$0xff]  ;;  %v316_v26 = vld [vmem:[%s1328_s1 + $0x168] sm:$0xff] }
  0x2f   : > { %811 = vmatpush.msk.msrb.mxu2 %vm393_vm0, %v381_v58  ;;  %813 = vmatpush.msk.msrb.mxu3 %vm393_vm0, %v382_v59  ;;  %v315_v25 = vld [vmem:[%s1328_s1 + $0x160] sm:$0xff]  ;;  %v317_v27 = vld [vmem:[%s1328_s1 + $0x170] sm:$0xff]  ;;  %v318_v28 = vld [vmem:[%s1328_s1 + $0x178] sm:$0xff] }
  0x30   : > { %501 = vmatpush.msrb.mxu0 %v371_v60  ;;  %521 = vmatpush.msrb.mxu1 %v372_v61  ;;  %v307_v29 = vld [vmem:[%s1328_s1 + $0x120] sm:$0xff]  ;;  %v308_v30 = vld [vmem:[%s1328_s1 + $0x128] sm:$0xff]  ;;  %v309_v31 = vld [vmem:[%s1328_s1 + $0x130] sm:$0xff] }
  0x31   : > { %541 = vmatpush.msrb.mxu2 %v373_v62  ;;  %561 = vmatpush.msrb.mxu3 %v374_v63  ;;  %v310_v32 = vld [vmem:[%s1328_s1 + $0x138] sm:$0xff]  ;;  %v299_v33 = vld [vmem:[%s1328_s1 + $0xe0] sm:$0xff]  ;;  %v300_v34 = vld [vmem:[%s1328_s1 + $0xe8] sm:$0xff] }
  0x32   : > { %502 = vmatpush.msrb.mxu0 %v363_v0  ;;  %522 = vmatpush.msrb.mxu1 %v364_v1  ;;  %v301_v35 = vld [vmem:[%s1328_s1 + $0xf0] sm:$0xff]  ;;  %v302_v36 = vld [vmem:[%s1328_s1 + $0xf8] sm:$0xff]  ;;  %v291_v37 = vld [vmem:[%s1328_s1 + $0xa0] sm:$0xff] }
  0x33   : > { %542 = vmatpush.msrb.mxu2 %v365_v2  ;;  %562 = vmatpush.msrb.mxu3 %v366_v3  ;;  %v292_v38 = vld [vmem:[%s1328_s1 + $0xa8] sm:$0xff]  ;;  %v293_v39 = vld [vmem:[%s1328_s1 + $0xb0] sm:$0xff]  ;;  %v294_v40 = vld [vmem:[%s1328_s1 + $0xb8] sm:$0xff] }
  0x34   : > { %503 = vmatpush.msrb.mxu0 %v355_v4  ;;  %523 = vmatpush.msrb.mxu1 %v356_v5  ;;  %v283_v41 = vld [vmem:[%s1328_s1 + $0x60] sm:$0xff]  ;;  %v284_v42 = vld [vmem:[%s1328_s1 + $0x68] sm:$0xff]  ;;  %v285_v43 = vld [vmem:[%s1328_s1 + $0x70] sm:$0xff] }
  0x35   : > { %543 = vmatpush.msrb.mxu2 %v357_v6  ;;  %563 = vmatpush.msrb.mxu3 %v358_v7  ;;  %v286_v44 = vld [vmem:[%s1328_s1 + $0x78] sm:$0xff]  ;;  %v275_v45 = vld [vmem:[%s1328_s1 + $0x20] sm:$0xff]  ;;  %v276_v46 = vld [vmem:[%s1328_s1 + $0x28] sm:$0xff] }
  0x36   : > { %504 = vmatpush.msrb.mxu0 %v347_v8  ;;  %524 = vmatpush.msrb.mxu1 %v348_v9  ;;  %v277_v47 = vld [vmem:[%s1328_s1 + $0x30] sm:$0xff]  ;;  %v278_v48 = vld [vmem:[%s1328_s1 + $0x38] sm:$0xff]  ;;  %v383_v49 = vld [vmem:[%s1329_s2] sm:$0xff] }
  0x37   : > { %544 = vmatpush.msrb.mxu2 %v349_v10  ;;  %564 = vmatpush.msrb.mxu3 %v350_v11 }
  0x38   : > { %505 = vmatpush.msrb.mxu0 %v339_v12  ;;  %525 = vmatpush.msrb.mxu1 %v340_v13 }
  0x39   : > { %545 = vmatpush.msrb.mxu2 %v341_v14  ;;  %565 = vmatpush.msrb.mxu3 %v342_v15 }
  0x3a   : > { %506 = vmatpush.msrb.mxu0 %v331_v16  ;;  %526 = vmatpush.msrb.mxu1 %v332_v17 }
  0x3b   : > { %546 = vmatpush.msrb.mxu2 %v333_v18  ;;  %566 = vmatpush.msrb.mxu3 %v334_v19 }
  0x3c   : > { %507 = vmatpush.msrb.mxu0 %v323_v20  ;;  %527 = vmatpush.msrb.mxu1 %v324_v21 }
  0x3d   : > { %547 = vmatpush.msrb.mxu2 %v325_v22  ;;  %567 = vmatpush.msrb.mxu3 %v326_v23 }
  0x3e   : > { %804 = vmatmul.msk.f32.vlgmr.msra.gmra.mxu2 %vm389_vm1, %v270_v24  ;;  %508 = vmatpush.msrb.mxu0 %v315_v25 }
  0x3f   : > { %528 = vmatpush.msrb.mxu1 %v316_v26  ;;  %548 = vmatpush.msrb.mxu2 %v317_v27 }
  0x40   : > { %568 = vmatpush.msrb.mxu3 %v318_v28  ;;  %509 = vmatpush.msrb.mxu0 %v307_v29 }
  0x41   : > { %806 = vmatmul.msk.f32.vlgmr.msra.gmra.mxu3 %vm389_vm1, %v270_v24  ;;  %529 = vmatpush.msrb.mxu1 %v308_v30 }
  0x42   : > { %549 = vmatpush.msrb.mxu2 %v309_v31  ;;  %569 = vmatpush.msrb.mxu3 %v310_v32 }
  0x43   : > { %800 = vmatmul.msk.f32.vlgmr.msra.gmra.mxu0 %vm389_vm1, %v270_v24  ;;  %802 = vmatmul.msk.f32.vlgmr.msra.gmra.mxu1 %vm389_vm1, %v270_v24 }
  0x44   : > { %510 = vmatpush.msrb.mxu0 %v299_v33  ;;  %530 = vmatpush.msrb.mxu1 %v300_v34  ;;  %v876_v34 = vmov 0.0  }
  0x45   : > { %550 = vmatpush.msrb.mxu2 %v301_v35  ;;  %570 = vmatpush.msrb.mxu3 %v302_v36  ;;  %268 = vst.msk [vmem:[#allocation3] sm:$0xff] %vm267_vm2, %v876_v34 }
  0x46   : > { %511 = vmatpush.msrb.mxu0 %v291_v37  ;;  %531 = vmatpush.msrb.mxu1 %v292_v38  ;;  %269 = vst.msk [vmem:[#allocation4] sm:$0xff] %vm267_vm2, %v876_v34 }
  0x47   : > { %551 = vmatpush.msrb.mxu2 %v293_v39  ;;  %571 = vmatpush.msrb.mxu3 %v294_v40 }
  0x48   : > { %512 = vmatpush.msrb.mxu0 %v283_v41  ;;  %532 = vmatpush.msrb.mxu1 %v284_v42 }
  0x49   : > { %552 = vmatpush.msrb.mxu2 %v285_v43  ;;  %572 = vmatpush.msrb.mxu3 %v286_v44 }
  0x4a   : > { %513 = vmatpush.msrb.mxu0 %v275_v45  ;;  %533 = vmatpush.msrb.mxu1 %v276_v46 }
  0x4b   : > { %553 = vmatpush.msrb.mxu2 %v277_v47  ;;  %573 = vmatpush.msrb.mxu3 %v278_v48 }
  0x4c   : > { %808 = vmatmul.msk.f32.vlgmr.msrb.gmra.mxu0 %vm389_vm1, %v270_v24  ;;  %810 = vmatmul.msk.f32.vlgmr.msrb.gmra.mxu1 %vm389_vm1, %v270_v24  ;;  %v597_v35 = vld [vmem:[#allocation3] sm:$0xff] }
  0x4d   : > { %812 = vmatmul.msk.f32.vlgmr.msrb.gmra.mxu2 %vm389_vm1, %v270_v24  ;;  %814 = vmatmul.msk.f32.vlgmr.msrb.gmra.mxu3 %vm389_vm1, %v270_v24  ;;  %v610_v37 = vld [vmem:[#allocation4] sm:$0xff] }
  0x4e   : > { %847 = vset.pattern.permute.xlu0 %v875_v50 }
  0x4f   : > { %386 = vperm.xlu0 %847, %v383_v49  }
  0xc0   : > { %v435_v51 = vpop.f32.mrf.mxu0  ;;  %v455_v52 = vpop.f32.mrf.mxu1 }
  0xc1   : > { %v387_v53 = vpop.permute.xlu0 %386  ;;  %v475_v54 = vpop.f32.mrf.mxu2 }
  0xc2   : > { %v436_v55 = vadd.f32 %v435_v51, %v387_v53  ;;  %v456_v56 = vadd.f32 %v455_v52, %v387_v53  ;;  %v476_v57 = vadd.f32 %v475_v54, %v387_v53 }
  0xc4   : > { %v578_v58 = vmax.f32 %v436_v55, 0.0  ;;  %v579_v59 = vmax.f32 %v456_v56, 0.0  ;;  %v580_v60 = vmax.f32 %v476_v57, 0.0  ;;  %v495_v61 = vpop.f32.mrf.mxu3 }
  0xc5   : > { %v496_v62 = vadd.f32 %v495_v61, %v387_v53 }
  0xc6   : > { %589 = vst [vmem:[#allocation2 + $0x30] sm:$0xff] %v578_v58  ;;  %v611_v63 = vmul.f32 %v578_v58, %v578_v58  ;;  %v598_v0 = vadd.f32 %v579_v59, %v578_v58  ;;  %v612_v1 = vmul.f32 %v579_v59, %v579_v59  ;;  %v613_v2 = vmul.f32 %v580_v60, %v580_v60 }
  0xc7   : > { %590 = vst [vmem:[#allocation2] sm:$0xff] %v579_v59  ;;  %v581_v3 = vmax.f32 %v496_v62, 0.0 }
  0xc8   : > { %v619_v4 = vadd.f32 %v612_v1, %v611_v63  ;;  %591 = vst [vmem:[#allocation2 + $0x18] sm:$0xff] %v580_v60  ;;  %v599_v5 = vadd.f32 %v598_v0, %v580_v60 }
  0xc9   : > { %592 = vst [vmem:[#allocation2 + $0x10] sm:$0xff] %v581_v3  ;;  %v515_v6 = vpop.f32.mrf.mxu0  ;;  %v535_v7 = vpop.f32.mrf.mxu1  ;;  %v614_v11 = vmul.f32 %v581_v3, %v581_v3 }
  0xca   : > { %v516_v8 = vadd.f32 %v515_v6, %v387_v53  ;;  %v536_v9 = vadd.f32 %v535_v7, %v387_v53  ;;  %v620_v10 = vadd.f32 %v619_v4, %v613_v2  ;;  %v600_v14 = vadd.f32 %v599_v5, %v581_v3 }
  0xcc   : > { %v582_v12 = vmax.f32 %v516_v8, 0.0  ;;  %v583_v13 = vmax.f32 %v536_v9, 0.0  ;;  %v621_v16 = vadd.f32 %v620_v10, %v614_v11 }
  0xce   : > { %593 = vst [vmem:[#allocation2 + $0x8] sm:$0xff] %v582_v12  ;;  %v615_v15 = vmul.f32 %v582_v12, %v582_v12  ;;  %v601_v17 = vadd.f32 %v600_v14, %v582_v12  ;;  %v616_v23 = vmul.f32 %v583_v13, %v583_v13 }
  0xcf   : > { %594 = vst [vmem:[#allocation2 + $0x20] sm:$0xff] %v583_v13 }
  0xd0   : > { %v555_v18 = vpop.f32.mrf.mxu2  ;;  %v575_v19 = vpop.f32.mrf.mxu3  ;;  %v622_v22 = vadd.f32 %v621_v16, %v615_v15  ;;  %v602_v26 = vadd.f32 %v601_v17, %v583_v13 }
  0xd1   : > { %v556_v20 = vadd.f32 %v555_v18, %v387_v53  ;;  %v576_v21 = vadd.f32 %v575_v19, %v387_v53 }
  0xd2   : > { %v623_v29 = vadd.f32 %v622_v22, %v616_v23 }
  0xd3   : > { %v584_v24 = vmax.f32 %v556_v20, 0.0  ;;  %v585_v25 = vmax.f32 %v576_v21, 0.0 }
  0xd5   : > { %595 = vst [vmem:[#allocation2 + $0x28] sm:$0xff] %v584_v24  ;;  %v603_v27 = vadd.f32 %v602_v26, %v584_v24  ;;  %v617_v28 = vmul.f32 %v584_v24, %v584_v24  ;;  %v618_v31 = vmul.f32 %v585_v25, %v585_v25 }
  0xd6   : > { %596 = vst [vmem:[#allocation2 + $0x38] sm:$0xff] %v585_v25 }
  0xd7   : > { %v604_v30 = vadd.f32 %v603_v27, %v585_v25  ;;  %v624_v32 = vadd.f32 %v623_v29, %v617_v28 }
  0xd9   : > { %605 = vadd.xlane.f32.xlu0 %v604_v30  ;;  %v625_v33 = vadd.f32 %v624_v32, %v618_v31 }
  0xdb   : > { %626 = vadd.xlane.f32.xlu1 %v625_v33 }
 0x14c   : > { %v606_v36 = vpop.xlane.xlu0 %605 }
 0x14d   : > { %v607_v38 = vadd.f32 %v606_v36, %v597_v35 }
 0x14e   : > { %v627_v39 = vpop.xlane.xlu1 %626 }
 0x14f   : > { %609 = vst.msk [vmem:[#allocation3] sm:$0xff] %vm267_vm2, %v607_v38  ;;  %v628_v40 = vadd.f32 %v627_v39, %v610_v37 }
 0x151   : > { %629 = vst.msk [vmem:[#allocation4] sm:$0xff] %vm267_vm2, %v628_v40 }
 0x152 PF: > { %p815_p5 = scmp.ne.s32.totalorder %s865_s18, 1 }
 0x154   : > { %633 = sbr.rel (%p815_p5) target bundleno = 517 (0x205), region = 52 }
 0x159   : > { %v638_v41 = vld [vmem:[#allocation3] sm:$0xff]  ;;  %v640_v42 = vld [vmem:[#allocation4] sm:$0xff]  ;;  %v877_v43 = vmov 0   ;;  %vm657_vm6 = vcmask 7168   ;;  %v667_v0 = vld [vmem:[#allocation2 + $0x30] sm:$0xff] }
 0x15a   : > { %848 = vset.pattern.permute.xlu0 %v877_v43  ;;  %v639_v44 = vmul.f32 0.0009765625, %v638_v41  ;;  %v641_v45 = vmul.f32 0.0009765625, %v640_v42  ;;  %v655_v55 = vld [vmem:[%s1330_s3] sm:$0xff]  ;;  %v669_v2 = vld [vmem:[#allocation2 + $0x18] sm:$0xff]  ;;  %v670_v3 = vld [vmem:[#allocation2 + $0x10] sm:$0xff] }
 0x15b   : > { %v659_v58 = vld [vmem:[%s1331_s4] sm:$0xff]  ;;  %v671_v4 = vld [vmem:[#allocation2 + $0x8] sm:$0xff]  ;;  %v674_v7 = vld [vmem:[#allocation2 + $0x38] sm:$0xff] }
 0x15c   : > { %v642_v46 = vmul.f32 %v639_v44, %v639_v44  ;;  %v668_v1 = vld [vmem:[#allocation2] sm:$0xff]  ;;  %v673_v6 = vld [vmem:[#allocation2 + $0x28] sm:$0xff] }
 0x15d   : > { %v672_v5 = vld [vmem:[#allocation2 + $0x20] sm:$0xff] }
 0x15e   : > { %v643_v47 = vsub.f32 %v641_v45, %v642_v46 }
 0x160   : > { %v644_v48 = vadd.f32 1e-05, %v643_v47 }
 0x162   : > { %849 = vrsqrt.f32 %v644_v48  ;;  %vm651_vm3 = vweird.f32 %v644_v48 }
 0x168   : > { %v850_v49 = vpop.eup %849 }
 0x169   : > { %v646_v50 = vmul.f32 %v850_v49, %v644_v48  ;;  %vm652_vm4 = vweird.f32 %v850_v49 }
 0x16a   : > { %vm653_vm5 = vmor %vm651_vm3, %vm652_vm4 }
 0x16b   : > { %v647_v51 = vmul.f32 %v850_v49, %v646_v50 }
 0x16d   : > { %v648_v52 = vmul.f32 0.5, %v647_v51 }
 0x16f   : > { %v649_v53 = vsub.f32 1.5, %v648_v52 }
 0x171   : > { %v650_v54 = vmul.f32 %v850_v49, %v649_v53 }
 0x173   : > { %v654_v56 = vsel %vm653_vm5, %v850_v49, %v650_v54 }
 0x174   : > { %v656_v57 = vmul.f32 %v655_v55, %v654_v56 }
 0x176   : > { %658 = vst.msk [vmem:[#allocation5] sm:$0xff] %vm657_vm6, %v656_v57  ;;  %v660_v59 = vmul.f32 %v656_v57, %v639_v44 }
 0x178   : > { %v661_v60 = vsub.f32 %v659_v58, %v660_v59 }
 0x17a   : > { %663 = vst.msk [vmem:[#allocation5 + $0x8] sm:$0xff] %vm657_vm6, %v661_v60 }
 0x17d   : > { %v675_v61 = vld [vmem:[#allocation5] sm:$0xff] }
 0x17e   : > { %678 = vperm.xlu0 %848, %v675_v61  }
 0x181   : > { %v690_v62 = vld [vmem:[#allocation5 + $0x8] sm:$0xff] }
 0x186   : > { %693 = vperm.xlu0 %848, %v690_v62  }
 0x1f0   : > { %v679_v63 = vpop.permute.xlu0 %678 }
 0x1f1   : > { %v681_v8 = vmul.f32 %v679_v63, %v667_v0  ;;  %v682_v9 = vmul.f32 %v679_v63, %v668_v1  ;;  %v683_v10 = vmul.f32 %v679_v63, %v669_v2  ;;  %v684_v11 = vmul.f32 %v679_v63, %v670_v3 }
 0x1f2   : > { %v685_v12 = vmul.f32 %v679_v63, %v671_v4  ;;  %v686_v13 = vmul.f32 %v679_v63, %v672_v5  ;;  %v687_v14 = vmul.f32 %v679_v63, %v673_v6  ;;  %v688_v20 = vmul.f32 %v679_v63, %v674_v7 }
 0x1f8   : > { %v694_v15 = vpop.permute.xlu0 %693 }
 0x1f9   : > { %v696_v16 = vadd.f32 %v694_v15, %v681_v8  ;;  %v697_v17 = vadd.f32 %v694_v15, %v682_v9  ;;  %v698_v18 = vadd.f32 %v694_v15, %v683_v10  ;;  %v699_v19 = vadd.f32 %v694_v15, %v684_v11 }
 0x1fa   : > { %v700_v21 = vadd.f32 %v694_v15, %v685_v12  ;;  %v701_v22 = vadd.f32 %v694_v15, %v686_v13  ;;  %v702_v23 = vadd.f32 %v694_v15, %v687_v14  ;;  %v703_v27 = vadd.f32 %v694_v15, %v688_v20 }
 0x1fb   : > { %v704_v24 = vmax.f32 %v696_v16, 0.0  ;;  %v705_v25 = vmax.f32 %v697_v17, 0.0  ;;  %v706_v26 = vmax.f32 %v698_v18, 0.0  ;;  %v707_v28 = vmax.f32 %v699_v19, 0.0 }
 0x1fc   : > { %v708_v29 = vmax.f32 %v700_v21, 0.0  ;;  %v709_v30 = vmax.f32 %v701_v22, 0.0  ;;  %v710_v31 = vmax.f32 %v702_v23, 0.0  ;;  %v711_v32 = vmax.f32 %v703_v27, 0.0 }
 0x1fd   : > { %712 = vst [vmem:[%s1332_s5] sm:$0xff] %v704_v24 }
 0x1fe   : > { %713 = vst [vmem:[%s1332_s5 + $0x8] sm:$0xff] %v705_v25 }
 0x1ff   : > { %714 = vst [vmem:[%s1332_s5 + $0x10] sm:$0xff] %v706_v26 }
 0x200   : > { %715 = vst [vmem:[%s1332_s5 + $0x18] sm:$0xff] %v707_v28 }
 0x201   : > { %716 = vst [vmem:[%s1332_s5 + $0x20] sm:$0xff] %v708_v29 }
 0x202   : > { %717 = vst [vmem:[%s1332_s5 + $0x28] sm:$0xff] %v709_v30 }
 0x203   : > { %718 = vst [vmem:[%s1332_s5 + $0x30] sm:$0xff] %v710_v31 }
 0x204   : > { %719 = vst [vmem:[%s1332_s5 + $0x38] sm:$0xff] %v711_v32 }
 0x205 PF: > { %s15_s20 = sadd.s32 1, %s873_s20   ;;  %s1333_s18 = smov %s869_s19 }
 0x206   : > { %p12_p6 = scmp.ge.s32.totalorder %s15_s20, 4   ;;  %s1334_s19 = smov %s1336_s21 }
 0x208   :  { %14 = sbr.rel (!%p12_p6) target bundleno = 2 (0x2), region = 90 }

</bundles_post_ra>
